<compile_context>
chip_gen: v7x
topology: tpu7x:2x2x1
jax: 0.10.0
libtpu: 0.0.40
codegen_flags: <defaults>
</compile_context>

<pallas_src>
import numpy as np
import jax
import jax.numpy as jnp
from jax.experimental import pallas as pl
from jax.experimental.pallas import tpu as pltpu


OUT_LANES = 128  # lane-dense output slab width (full vreg lane extent)


# ----------------------------------------------------------------------------
# Fused Pallas kernel
# ----------------------------------------------------------------------------

def _enc_norm(x, w_t, b):
    """normalize(x @ W^T + b, p=2, dim=-1) with W passed transposed (in, out)."""
    h = jnp.dot(x, w_t, preferred_element_type=jnp.float32) + b
    ss = jnp.sum(h * h, axis=-1, keepdims=True)
    return h * jax.lax.rsqrt(jnp.maximum(ss, 1e-24))


def fused_selector_kernel(loop_s_ref, edge_s_ref, rq_ref, rrq_ref,
                          loop_wt_ref, loop_b_ref, edge_wt_ref, edge_b_ref,
                          rq_wt_ref, rq_b_ref, rrq_wt_ref, rrq_b_ref,
                          lp_w_ref, lp_b_ref, ep_w_ref, ep_b_ref,
                          loop_out_ref, edge_out_ref):
    # strategy encoders; encodings stay in VMEM / vregs, never hit HBM
    loop_enc = _enc_norm(loop_s_ref[...], loop_wt_ref[...], loop_b_ref[...])  # (L, H)
    edge_enc = _enc_norm(edge_s_ref[...], edge_wt_ref[...], edge_b_ref[...])  # (E, H)

    def _score_path(x, wt, b, pw_row, pb, enc, out_ref):
        hn = _enc_norm(x, wt, b)                                  # (N, H)
        # merge predictor column + strategy encodings into one RHS: (1+S, H)
        rhs = jnp.concatenate([pw_row, enc], axis=0)
        # contract on the feature dim (A @ B^T) -> (N, 1+S), one MXU pass
        logits = jax.lax.dot_general(
            hn, rhs, (((1,), (1,)), ((), ())),
            preferred_element_type=jnp.float32)
        score = jax.nn.sigmoid(logits[:, 0:1] + pb)               # (N, 1)
        s = logits[:, 1:]
        s = s - jnp.max(s, axis=-1, keepdims=True)
        e = jnp.exp(s)
        probs = e * pl.reciprocal(jnp.sum(e, axis=-1, keepdims=True), approx=True)
        n = x.shape[0]
        w = 1 + enc.shape[0]
        pad = jnp.zeros((n, OUT_LANES - w), jnp.float32)
        # single full-width, unmasked store per path
        out_ref[...] = jnp.concatenate([score, probs, pad], axis=-1)

    _score_path(rq_ref[...], rq_wt_ref[...], rq_b_ref[...],
                lp_w_ref[...], lp_b_ref[...], loop_enc, loop_out_ref)
    _score_path(rrq_ref[...], rrq_wt_ref[...], rrq_b_ref[...],
                ep_w_ref[...], ep_b_ref[...], edge_enc, edge_out_ref)


def _full_spec(shape):
    shape = tuple(int(d) for d in shape)
    nd = len(shape)
    return pl.BlockSpec(shape, lambda i, _nd=nd: (0,) * _nd)


@jax.jit
def fused_selector_call(loop_strat, edge_strat, rq_in, rrq_in, params):
    rp = int(rq_in.shape[0])
    pp = int(rrq_in.shape[0])
    n_loop = int(loop_strat.shape[0])
    n_edge = int(edge_strat.shape[0])
    assert 1 + n_loop <= OUT_LANES and 1 + n_edge <= OUT_LANES
    in_arrays = (loop_strat, edge_strat, rq_in, rrq_in,
                 params["loop_Wt"], params["loop_b"],
                 params["edge_Wt"], params["edge_b"],
                 params["rq_Wt"], params["rq_b"],
                 params["rrq_Wt"], params["rrq_b"],
                 params["lp_w"], params["lp_b"],
                 params["ep_w"], params["ep_b"])
    return pl.pallas_call(
        fused_selector_kernel,
        out_shape=(jax.ShapeDtypeStruct((rp, OUT_LANES), jnp.float32),
                   jax.ShapeDtypeStruct((pp, OUT_LANES), jnp.float32)),
        grid=(1,),
        in_specs=[_full_spec(a.shape) for a in in_arrays],
        out_specs=(_full_spec((rp, OUT_LANES)), _full_spec((pp, OUT_LANES))),
        compiler_params=pltpu.CompilerParams(
            dimension_semantics=("arbitrary",)),
    )(*in_arrays)


# ----------------------------------------------------------------------------
# Host-side glue (parameter init, sampling, cycle check)
# ----------------------------------------------------------------------------

def has_cycle_directed(edges, drop_self_loops=True):
    adj, nodes = {}, set()
    for src, dst, _ in edges:
        if drop_self_loops and src == dst:
            continue
        adj.setdefault(src, []).append(dst)
        nodes.add(src)
        nodes.add(dst)
    WHITE, GRAY, BLACK = 0, 1, 2
    color = {n: WHITE for n in nodes}

    def dfs(u):
        color[u] = GRAY
        for v in adj.get(u, []):
            if color[v] == GRAY:
                return True
            if color[v] == WHITE and dfs(v):
                return True
        color[u] = BLACK
        return False

    return any(color[n] == WHITE and dfs(n) for n in list(nodes))


def init_linear(key, in_f, out_f):
    # deterministic init mimicking nn.Linear's uniform(-1/sqrt(in), 1/sqrt(in))
    k_w, k_b = jax.random.split(key)
    bound = 1.0 / np.sqrt(in_f)
    w = jax.random.uniform(k_w, (out_f, in_f), jnp.float32, -bound, bound)
    b = jax.random.uniform(k_b, (out_f,), jnp.float32, -bound, bound)
    return w, b


def _pad_rows(a, mult=8):
    n = a.shape[0]
    n_pad = ((n + mult - 1) // mult) * mult
    if n_pad == n:
        return a
    pad = np.zeros((n_pad - n, a.shape[1]), a.dtype)
    return np.concatenate([a, pad], axis=0)


def strategy_selector_forward(params, query, roles, edge_strat, loop_strat, seed):
    D = int(query.shape[-1])
    R = int(roles.shape[0])
    L = int(loop_strat.shape[0])
    E = int(edge_strat.shape[0])

    # single host fetch of the tiny embeddings; input assembly is pure numpy
    query_np, roles_np = jax.device_get((query, roles))
    query_np = np.asarray(query_np, np.float32).reshape(1, D)
    roles_np = np.asarray(roles_np, np.float32)

    # role-query inputs, batched over all roles            -> (R, 2D)
    rq_in = np.concatenate([roles_np, np.broadcast_to(query_np, (R, D))], axis=-1)
    # role-role-query inputs, batched over ordered pairs   -> (P, 3D)
    pairs = [(i, j) for i in range(R) for j in range(R) if i != j]
    idx_i = np.asarray([p[0] for p in pairs])
    idx_j = np.asarray([p[1] for p in pairs])
    P = len(pairs)
    rrq_in = np.concatenate([roles_np[idx_i], roles_np[idx_j],
                             np.broadcast_to(query_np, (P, D))], axis=-1)

    rq_in_p = _pad_rows(rq_in.astype(np.float32))     # pad N to multiple of 8
    rrq_in_p = _pad_rows(rrq_in.astype(np.float32))

    # --- one fused Pallas kernel for the whole compute hot path ---
    loop_out_dev, edge_out_dev = fused_selector_call(
        loop_strat, edge_strat, rq_in_p, rrq_in_p, params)

    # single host fetch of both lane-dense output slabs
    loop_out, edge_out = jax.device_get((loop_out_dev, edge_out_dev))
    loop_out = np.asarray(loop_out)
    edge_out = np.asarray(edge_out)

    # --- sampling / edge selection (host, stochastic, data-dependent) ---
    # TODO(synk): torch.bernoulli / torch.multinomial / cycle check have no
    # clean Pallas equivalent (data-dependent control flow) -> host numpy RNG.
    rng = np.random.default_rng(seed)
    selected_edge_tuple = []
    log_probs = 0.0

    for i in range(R):
        p = float(loop_out[i, 0])
        if rng.random() < p:
            probs = loop_out[i, 1:1 + L].astype(np.float64)
            probs = probs / probs.sum()
            strat_idx = int(rng.choice(L, p=probs))
            selected_edge_tuple.append((i, i, strat_idx))
            log_probs += np.log(p) + np.log(probs[strat_idx] + 1e-5)
        else:
            log_probs += np.log(1.0 - p + 1e-5)

    for k, (i, j) in enumerate(pairs):
        p = float(edge_out[k, 0])
        if rng.random() < p:
            probs = edge_out[k, 1:1 + E].astype(np.float64)
            probs = probs / probs.sum()
            strat_idx = int(rng.choice(E, p=probs))
            new_edge = (i, j, strat_idx)
            if not has_cycle_directed(selected_edge_tuple + [new_edge],
                                      drop_self_loops=True):
                selected_edge_tuple.append(new_edge)
                log_probs += np.log(p) + np.log(probs[strat_idx] + 1e-5)
        else:
            log_probs += np.log(1.0 - p + 1e-5)

    return selected_edge_tuple, jnp.asarray([log_probs], dtype=jnp.float32)


# ----------------------------------------------------------------------------
# main
# ----------------------------------------------------------------------------

if __name__ == "__main__":
    D, H = 32, 32          # in_dim, hidden_dim
    R = 4                  # number of selected roles
    L, E = 8, 8            # number of loop / edge strategies

    root = jax.random.PRNGKey(0)
    keys = jax.random.split(root, 12)

    # module parameters (Linear weights stored transposed: (in, out))
    rq_W, rq_b = init_linear(keys[0], 2 * D, H)      # role_query_encoder
    rrq_W, rrq_b = init_linear(keys[1], 3 * D, H)    # role_role_query_encoder
    loop_W, loop_b = init_linear(keys[2], D, H)      # loop_strategy_encoder
    edge_W, edge_b = init_linear(keys[3], D, H)      # edge_strategy_encoder
    lp_W, lp_b = init_linear(keys[4], H, 1)          # loop_predictor: W (1,H)
    ep_W, ep_b = init_linear(keys[5], H, 1)          # edge_predictor: W (1,H)

    params = dict(
        rq_Wt=rq_W.T, rq_b=rq_b.reshape(1, H),
        rrq_Wt=rrq_W.T, rrq_b=rrq_b.reshape(1, H),
        loop_Wt=loop_W.T, loop_b=loop_b.reshape(1, H),
        edge_Wt=edge_W.T, edge_b=edge_b.reshape(1, H),
        lp_w=lp_W, lp_b=lp_b.reshape(1, 1),          # (1,H) predictor row
        ep_w=ep_W, ep_b=ep_b.reshape(1, 1),
    )

    # example inputs
    query_embedding = jax.random.normal(keys[6], (1, D), jnp.float32)
    selected_role_embedding = jax.random.normal(keys[7], (R, D), jnp.float32)
    edge_strategy_embedding = jax.random.normal(keys[8], (E, D), jnp.float32)
    loop_strategy_embedding = jax.random.normal(keys[9], (L, D), jnp.float32)

    selected_edges, log_probs = strategy_selector_forward(
        params, query_embedding, selected_role_embedding,
        edge_strategy_embedding, loop_strategy_embedding,
        seed=0)

    jax.block_until_ready(log_probs)
    assert log_probs.shape == (1,)
    assert bool(np.isfinite(np.asarray(log_probs)).all())
    assert all(len(t) == 3 for t in selected_edges)
    print("KERNEL_OK")
</pallas_src>

<mosaic_0001>
module attributes {stable_mosaic.version = 11 : i64} {
  func.func @fused_selector_kernel(%arg0: i32, %arg1: memref<8x32xf32, #tpu.memory_space<vmem>>, %arg2: memref<8x32xf32, #tpu.memory_space<vmem>>, %arg3: memref<8x64xf32, #tpu.memory_space<vmem>>, %arg4: memref<16x96xf32, #tpu.memory_space<vmem>>, %arg5: memref<32x32xf32, #tpu.memory_space<vmem>>, %arg6: memref<1x32xf32, #tpu.memory_space<vmem>>, %arg7: memref<32x32xf32, #tpu.memory_space<vmem>>, %arg8: memref<1x32xf32, #tpu.memory_space<vmem>>, %arg9: memref<64x32xf32, #tpu.memory_space<vmem>>, %arg10: memref<1x32xf32, #tpu.memory_space<vmem>>, %arg11: memref<96x32xf32, #tpu.memory_space<vmem>>, %arg12: memref<1x32xf32, #tpu.memory_space<vmem>>, %arg13: memref<1x32xf32, #tpu.memory_space<vmem>>, %arg14: memref<1x1xf32, #tpu.memory_space<vmem>>, %arg15: memref<1x32xf32, #tpu.memory_space<vmem>>, %arg16: memref<1x1xf32, #tpu.memory_space<vmem>>, %arg17: memref<8x128xf32, #tpu.memory_space<vmem>>, %arg18: memref<16x128xf32, #tpu.memory_space<vmem>>) attributes {dimension_semantics = [#tpu.dimension_semantics<arbitrary>], iteration_bounds = array<i64: 1>, scalar_prefetch = 0 : i64, scratch_operands = 0 : i64, tpu.core_type = #tpu.core_type<tc>, window_params = [{pipeline_mode = #tpu.pipeline_mode<synchronous>, transform_indices = @transform_0, window_bounds = array<i64: 8, 32>}, {pipeline_mode = #tpu.pipeline_mode<synchronous>, transform_indices = @transform_1, window_bounds = array<i64: 8, 32>}, {pipeline_mode = #tpu.pipeline_mode<synchronous>, transform_indices = @transform_2, window_bounds = array<i64: 8, 64>}, {pipeline_mode = #tpu.pipeline_mode<synchronous>, transform_indices = @transform_3, window_bounds = array<i64: 16, 96>}, {pipeline_mode = #tpu.pipeline_mode<synchronous>, transform_indices = @transform_4, window_bounds = array<i64: 32, 32>}, {pipeline_mode = #tpu.pipeline_mode<synchronous>, transform_indices = @transform_5, window_bounds = array<i64: 1, 32>}, {pipeline_mode = #tpu.pipeline_mode<synchronous>, transform_indices = @transform_6, window_bounds = array<i64: 32, 32>}, {pipeline_mode = #tpu.pipeline_mode<synchronous>, transform_indices = @transform_7, window_bounds = array<i64: 1, 32>}, {pipeline_mode = #tpu.pipeline_mode<synchronous>, transform_indices = @transform_8, window_bounds = array<i64: 64, 32>}, {pipeline_mode = #tpu.pipeline_mode<synchronous>, transform_indices = @transform_9, window_bounds = array<i64: 1, 32>}, {pipeline_mode = #tpu.pipeline_mode<synchronous>, transform_indices = @transform_10, window_bounds = array<i64: 96, 32>}, {pipeline_mode = #tpu.pipeline_mode<synchronous>, transform_indices = @transform_11, window_bounds = array<i64: 1, 32>}, {pipeline_mode = #tpu.pipeline_mode<synchronous>, transform_indices = @transform_12, window_bounds = array<i64: 1, 32>}, {pipeline_mode = #tpu.pipeline_mode<synchronous>, transform_indices = @transform_13, window_bounds = array<i64: 1, 1>}, {pipeline_mode = #tpu.pipeline_mode<synchronous>, transform_indices = @transform_14, window_bounds = array<i64: 1, 32>}, {pipeline_mode = #tpu.pipeline_mode<synchronous>, transform_indices = @transform_15, window_bounds = array<i64: 1, 1>}, {pipeline_mode = #tpu.pipeline_mode<synchronous>, transform_indices = @transform_16, window_bounds = array<i64: 8, 128>}, {pipeline_mode = #tpu.pipeline_mode<synchronous>, transform_indices = @transform_17, window_bounds = array<i64: 16, 128>}]} {
    %c0 = arith.constant 0 : index
    %c0_0 = arith.constant 0 : index
    %0 = vector.load %arg1[%c0, %c0_0] : memref<8x32xf32, #tpu.memory_space<vmem>>, vector<8x32xf32>
    %c0_1 = arith.constant 0 : index
    %c0_2 = arith.constant 0 : index
    %1 = vector.load %arg5[%c0_1, %c0_2] : memref<32x32xf32, #tpu.memory_space<vmem>>, vector<32x32xf32>
    %c0_3 = arith.constant 0 : index
    %c0_4 = arith.constant 0 : index
    %2 = vector.load %arg6[%c0_3, %c0_4] : memref<1x32xf32, #tpu.memory_space<vmem>>, vector<1x32xf32>
    %cst = arith.constant dense<0.000000e+00> : vector<8x32xf32>
    %3 = tpu.matmul %0, %1, %cst {dimension_numbers = #tpu.dot_dimension_numbers<[1], [0], [0], [1], [0, 0, 1, 1], [], []>} : vector<8x32xf32>, vector<32x32xf32>, vector<8x32xf32> -> vector<8x32xf32>
    %4 = vector.broadcast %2 : vector<1x32xf32> to vector<8x32xf32>
    %5 = arith.addf %3, %4 : vector<8x32xf32>
    %6 = arith.mulf %5, %5 : vector<8x32xf32>
    %cst_5 = arith.constant dense<0.000000e+00> : vector<8xf32>
    %7 = vector.multi_reduction <add>, %6, %cst_5 [1] : vector<8x32xf32> to vector<8xf32>
    %8 = vector.shape_cast %7 : vector<8xf32> to vector<8x1xf32>
    %cst_6 = arith.constant 1.000000e-24 : f32
    %9 = vector.broadcast %cst_6 : f32 to vector<8x1xf32>
    %10 = arith.maximumf %8, %9 : vector<8x1xf32>
    %11 = math.rsqrt %10 : vector<8x1xf32>
    %12 = vector.broadcast %11 : vector<8x1xf32> to vector<8x32xf32>
    %13 = arith.mulf %5, %12 : vector<8x32xf32>
    %c0_7 = arith.constant 0 : index
    %c0_8 = arith.constant 0 : index
    %14 = vector.load %arg2[%c0_7, %c0_8] : memref<8x32xf32, #tpu.memory_space<vmem>>, vector<8x32xf32>
    %c0_9 = arith.constant 0 : index
    %c0_10 = arith.constant 0 : index
    %15 = vector.load %arg7[%c0_9, %c0_10] : memref<32x32xf32, #tpu.memory_space<vmem>>, vector<32x32xf32>
    %c0_11 = arith.constant 0 : index
    %c0_12 = arith.constant 0 : index
    %16 = vector.load %arg8[%c0_11, %c0_12] : memref<1x32xf32, #tpu.memory_space<vmem>>, vector<1x32xf32>
    %cst_13 = arith.constant dense<0.000000e+00> : vector<8x32xf32>
    %17 = tpu.matmul %14, %15, %cst_13 {dimension_numbers = #tpu.dot_dimension_numbers<[1], [0], [0], [1], [0, 0, 1, 1], [], []>} : vector<8x32xf32>, vector<32x32xf32>, vector<8x32xf32> -> vector<8x32xf32>
    %18 = vector.broadcast %16 : vector<1x32xf32> to vector<8x32xf32>
    %19 = arith.addf %17, %18 : vector<8x32xf32>
    %20 = arith.mulf %19, %19 : vector<8x32xf32>
    %cst_14 = arith.constant dense<0.000000e+00> : vector<8xf32>
    %21 = vector.multi_reduction <add>, %20, %cst_14 [1] : vector<8x32xf32> to vector<8xf32>
    %22 = vector.shape_cast %21 : vector<8xf32> to vector<8x1xf32>
    %cst_15 = arith.constant 1.000000e-24 : f32
    %23 = vector.broadcast %cst_15 : f32 to vector<8x1xf32>
    %24 = arith.maximumf %22, %23 : vector<8x1xf32>
    %25 = math.rsqrt %24 : vector<8x1xf32>
    %26 = vector.broadcast %25 : vector<8x1xf32> to vector<8x32xf32>
    %27 = arith.mulf %19, %26 : vector<8x32xf32>
    %c0_16 = arith.constant 0 : index
    %c0_17 = arith.constant 0 : index
    %28 = vector.load %arg3[%c0_16, %c0_17] : memref<8x64xf32, #tpu.memory_space<vmem>>, vector<8x64xf32>
    %c0_18 = arith.constant 0 : index
    %c0_19 = arith.constant 0 : index
    %29 = vector.load %arg9[%c0_18, %c0_19] : memref<64x32xf32, #tpu.memory_space<vmem>>, vector<64x32xf32>
    %c0_20 = arith.constant 0 : index
    %c0_21 = arith.constant 0 : index
    %30 = vector.load %arg10[%c0_20, %c0_21] : memref<1x32xf32, #tpu.memory_space<vmem>>, vector<1x32xf32>
    %c0_22 = arith.constant 0 : index
    %c0_23 = arith.constant 0 : index
    %31 = vector.load %arg13[%c0_22, %c0_23] : memref<1x32xf32, #tpu.memory_space<vmem>>, vector<1x32xf32>
    %c0_24 = arith.constant 0 : index
    %c0_25 = arith.constant 0 : index
    %32 = vector.load %arg14[%c0_24, %c0_25] : memref<1x1xf32, #tpu.memory_space<vmem>>, vector<1x1xf32>
    %cst_26 = arith.constant dense<0.000000e+00> : vector<8x32xf32>
    %33 = tpu.matmul %28, %29, %cst_26 {dimension_numbers = #tpu.dot_dimension_numbers<[1], [0], [0], [1], [0, 0, 1, 1], [], []>} : vector<8x64xf32>, vector<64x32xf32>, vector<8x32xf32> -> vector<8x32xf32>
    %34 = vector.broadcast %30 : vector<1x32xf32> to vector<8x32xf32>
    %35 = arith.addf %33, %34 : vector<8x32xf32>
    %36 = arith.mulf %35, %35 : vector<8x32xf32>
    %cst_27 = arith.constant dense<0.000000e+00> : vector<8xf32>
    %37 = vector.multi_reduction <add>, %36, %cst_27 [1] : vector<8x32xf32> to vector<8xf32>
    %38 = vector.shape_cast %37 : vector<8xf32> to vector<8x1xf32>
    %cst_28 = arith.constant 1.000000e-24 : f32
    %39 = vector.broadcast %cst_28 : f32 to vector<8x1xf32>
    %40 = arith.maximumf %38, %39 : vector<8x1xf32>
    %41 = math.rsqrt %40 : vector<8x1xf32>
    %42 = vector.broadcast %41 : vector<8x1xf32> to vector<8x32xf32>
    %43 = arith.mulf %35, %42 : vector<8x32xf32>
    %44 = tpu.concatenate %31, %13 in 0 : vector<1x32xf32>, vector<8x32xf32> -> vector<9x32xf32>
    %cst_29 = arith.constant dense<0.000000e+00> : vector<8x9xf32>
    %45 = tpu.matmul %43, %44, %cst_29 {dimension_numbers = #tpu.dot_dimension_numbers<[1], [1], [0], [0], [0, 0, 1, 0], [], []>} : vector<8x32xf32>, vector<9x32xf32>, vector<8x9xf32> -> vector<8x9xf32>
    %46 = vector.extract_strided_slice %45 {offsets = [0, 0], sizes = [8, 1], strides = [1, 1]} : vector<8x9xf32> to vector<8x1xf32>
    %47 = vector.broadcast %32 : vector<1x1xf32> to vector<8x1xf32>
    %48 = arith.addf %46, %47 : vector<8x1xf32>
    %49 = arith.negf %48 : vector<8x1xf32>
    %50 = math.exp %49 : vector<8x1xf32>
    %cst_30 = arith.constant 1.000000e+00 : f32
    %51 = vector.broadcast %cst_30 : f32 to vector<8x1xf32>
    %52 = arith.addf %51, %50 : vector<8x1xf32>
    %53 = arith.divf %51, %52 : vector<8x1xf32>
    %54 = vector.extract_strided_slice %45 {offsets = [0, 1], sizes = [8, 8], strides = [1, 1]} : vector<8x9xf32> to vector<8x8xf32>
    %cst_31 = arith.constant dense<0xFF800000> : vector<8xf32>
    %55 = vector.multi_reduction <maximumf>, %54, %cst_31 [1] : vector<8x8xf32> to vector<8xf32>
    %56 = vector.shape_cast %55 : vector<8xf32> to vector<8x1xf32>
    %57 = vector.broadcast %56 : vector<8x1xf32> to vector<8x8xf32>
    %58 = arith.subf %54, %57 : vector<8x8xf32>
    %59 = math.exp %58 : vector<8x8xf32>
    %cst_32 = arith.constant dense<0.000000e+00> : vector<8xf32>
    %60 = vector.multi_reduction <add>, %59, %cst_32 [1] : vector<8x8xf32> to vector<8xf32>
    %61 = vector.shape_cast %60 : vector<8xf32> to vector<8x1xf32>
    %62 = tpu.reciprocal %61 {approx = true} : vector<8x1xf32> -> vector<8x1xf32>
    %63 = vector.broadcast %62 : vector<8x1xf32> to vector<8x8xf32>
    %64 = arith.mulf %59, %63 : vector<8x8xf32>
    %cst_33 = arith.constant 0.000000e+00 : f32
    %65 = vector.broadcast %cst_33 : f32 to vector<8x119xf32>
    %66 = tpu.concatenate %53, %64, %65 in 1 : vector<8x1xf32>, vector<8x8xf32>, vector<8x119xf32> -> vector<8x128xf32>
    %c0_34 = arith.constant 0 : index
    %c0_35 = arith.constant 0 : index
    %67 = vector.load %arg17[%c0_34, %c0_35] : memref<8x128xf32, #tpu.memory_space<vmem>>, vector<8x128xf32>
    tpu.vector_store %arg17[%c0_34, %c0_35], %66 {strides = array<i32>} : memref<8x128xf32, #tpu.memory_space<vmem>>, vector<8x128xf32>,
    %c0_36 = arith.constant 0 : index
    %c0_37 = arith.constant 0 : index
    %68 = vector.load %arg4[%c0_36, %c0_37] : memref<16x96xf32, #tpu.memory_space<vmem>>, vector<16x96xf32>
    %c0_38 = arith.constant 0 : index
    %c0_39 = arith.constant 0 : index
    %69 = vector.load %arg11[%c0_38, %c0_39] : memref<96x32xf32, #tpu.memory_space<vmem>>, vector<96x32xf32>
    %c0_40 = arith.constant 0 : index
    %c0_41 = arith.constant 0 : index
    %70 = vector.load %arg12[%c0_40, %c0_41] : memref<1x32xf32, #tpu.memory_space<vmem>>, vector<1x32xf32>
    %c0_42 = arith.constant 0 : index
    %c0_43 = arith.constant 0 : index
    %71 = vector.load %arg15[%c0_42, %c0_43] : memref<1x32xf32, #tpu.memory_space<vmem>>, vector<1x32xf32>
    %c0_44 = arith.constant 0 : index
    %c0_45 = arith.constant 0 : index
    %72 = vector.load %arg16[%c0_44, %c0_45] : memref<1x1xf32, #tpu.memory_space<vmem>>, vector<1x1xf32>
    %cst_46 = arith.constant dense<0.000000e+00> : vector<16x32xf32>
    %73 = tpu.matmul %68, %69, %cst_46 {dimension_numbers = #tpu.dot_dimension_numbers<[1], [0], [0], [1], [0, 0, 1, 1], [], []>} : vector<16x96xf32>, vector<96x32xf32>, vector<16x32xf32> -> vector<16x32xf32>
    %74 = vector.broadcast %70 : vector<1x32xf32> to vector<16x32xf32>
    %75 = arith.addf %73, %74 : vector<16x32xf32>
    %76 = arith.mulf %75, %75 : vector<16x32xf32>
    %cst_47 = arith.constant dense<0.000000e+00> : vector<16xf32>
    %77 = vector.multi_reduction <add>, %76, %cst_47 [1] : vector<16x32xf32> to vector<16xf32>
    %78 = vector.shape_cast %77 : vector<16xf32> to vector<16x1xf32>
    %cst_48 = arith.constant 1.000000e-24 : f32
    %79 = vector.broadcast %cst_48 : f32 to vector<16x1xf32>
    %80 = arith.maximumf %78, %79 : vector<16x1xf32>
    %81 = math.rsqrt %80 : vector<16x1xf32>
    %82 = vector.broadcast %81 : vector<16x1xf32> to vector<16x32xf32>
    %83 = arith.mulf %75, %82 : vector<16x32xf32>
    %84 = tpu.concatenate %71, %27 in 0 : vector<1x32xf32>, vector<8x32xf32> -> vector<9x32xf32>
    %cst_49 = arith.constant dense<0.000000e+00> : vector<16x9xf32>
    %85 = tpu.matmul %83, %84, %cst_49 {dimension_numbers = #tpu.dot_dimension_numbers<[1], [1], [0], [0], [0, 0, 1, 0], [], []>} : vector<16x32xf32>, vector<9x32xf32>, vector<16x9xf32> -> vector<16x9xf32>
    %86 = vector.extract_strided_slice %85 {offsets = [0, 0], sizes = [16, 1], strides = [1, 1]} : vector<16x9xf32> to vector<16x1xf32>
    %87 = vector.broadcast %72 : vector<1x1xf32> to vector<16x1xf32>
    %88 = arith.addf %86, %87 : vector<16x1xf32>
    %89 = arith.negf %88 : vector<16x1xf32>
    %90 = math.exp %89 : vector<16x1xf32>
    %cst_50 = arith.constant 1.000000e+00 : f32
    %91 = vector.broadcast %cst_50 : f32 to vector<16x1xf32>
    %92 = arith.addf %91, %90 : vector<16x1xf32>
    %93 = arith.divf %91, %92 : vector<16x1xf32>
    %94 = vector.extract_strided_slice %85 {offsets = [0, 1], sizes = [16, 8], strides = [1, 1]} : vector<16x9xf32> to vector<16x8xf32>
    %cst_51 = arith.constant dense<0xFF800000> : vector<16xf32>
    %95 = vector.multi_reduction <maximumf>, %94, %cst_51 [1] : vector<16x8xf32> to vector<16xf32>
    %96 = vector.shape_cast %95 : vector<16xf32> to vector<16x1xf32>
    %97 = vector.broadcast %96 : vector<16x1xf32> to vector<16x8xf32>
    %98 = arith.subf %94, %97 : vector<16x8xf32>
    %99 = math.exp %98 : vector<16x8xf32>
    %cst_52 = arith.constant dense<0.000000e+00> : vector<16xf32>
    %100 = vector.multi_reduction <add>, %99, %cst_52 [1] : vector<16x8xf32> to vector<16xf32>
    %101 = vector.shape_cast %100 : vector<16xf32> to vector<16x1xf32>
    %102 = tpu.reciprocal %101 {approx = true} : vector<16x1xf32> -> vector<16x1xf32>
    %103 = vector.broadcast %102 : vector<16x1xf32> to vector<16x8xf32>
    %104 = arith.mulf %99, %103 : vector<16x8xf32>
    %cst_53 = arith.constant 0.000000e+00 : f32
    %105 = vector.broadcast %cst_53 : f32 to vector<16x119xf32>
    %106 = tpu.concatenate %93, %104, %105 in 1 : vector<16x1xf32>, vector<16x8xf32>, vector<16x119xf32> -> vector<16x128xf32>
    %c0_54 = arith.constant 0 : index
    %c0_55 = arith.constant 0 : index
    %107 = vector.load %arg18[%c0_54, %c0_55] : memref<16x128xf32, #tpu.memory_space<vmem>>, vector<16x128xf32>
    tpu.vector_store %arg18[%c0_54, %c0_55], %106 {strides = array<i32>} : memref<16x128xf32, #tpu.memory_space<vmem>>, vector<16x128xf32>,
    return
  }
  func.func @transform_0(%arg0: i32) -> (i32, i32) {
    %c0_i32 = arith.constant 0 : i32
    %c0_i32_0 = arith.constant 0 : i32
    %c0_i32_1 = arith.constant 0 : i32
    return %c0_i32, %c0_i32_0 : i32, i32
  }
  func.func @transform_1(%arg0: i32) -> (i32, i32) {
    %c0_i32 = arith.constant 0 : i32
    %c0_i32_0 = arith.constant 0 : i32
    %c0_i32_1 = arith.constant 0 : i32
    return %c0_i32, %c0_i32_0 : i32, i32
  }
  func.func @transform_2(%arg0: i32) -> (i32, i32) {
    %c0_i32 = arith.constant 0 : i32
    %c0_i32_0 = arith.constant 0 : i32
    %c0_i32_1 = arith.constant 0 : i32
    return %c0_i32, %c0_i32_0 : i32, i32
  }
  func.func @transform_3(%arg0: i32) -> (i32, i32) {
    %c0_i32 = arith.constant 0 : i32
    %c0_i32_0 = arith.constant 0 : i32
    %c0_i32_1 = arith.constant 0 : i32
    return %c0_i32, %c0_i32_0 : i32, i32
  }
  func.func @transform_4(%arg0: i32) -> (i32, i32) {
    %c0_i32 = arith.constant 0 : i32
    %c0_i32_0 = arith.constant 0 : i32
    %c0_i32_1 = arith.constant 0 : i32
    return %c0_i32, %c0_i32_0 : i32, i32
  }
  func.func @transform_5(%arg0: i32) -> (i32, i32) {
    %c0_i32 = arith.constant 0 : i32
    %c0_i32_0 = arith.constant 0 : i32
    %c0_i32_1 = arith.constant 0 : i32
    return %c0_i32, %c0_i32_0 : i32, i32
  }
  func.func @transform_6(%arg0: i32) -> (i32, i32) {
    %c0_i32 = arith.constant 0 : i32
    %c0_i32_0 = arith.constant 0 : i32
    %c0_i32_1 = arith.constant 0 : i32
    return %c0_i32, %c0_i32_0 : i32, i32
  }
  func.func @transform_7(%arg0: i32) -> (i32, i32) {
    %c0_i32 = arith.constant 0 : i32
    %c0_i32_0 = arith.constant 0 : i32
    %c0_i32_1 = arith.constant 0 : i32
    return %c0_i32, %c0_i32_0 : i32, i32
  }
  func.func @transform_8(%arg0: i32) -> (i32, i32) {
    %c0_i32 = arith.constant 0 : i32
    %c0_i32_0 = arith.constant 0 : i32
    %c0_i32_1 = arith.constant 0 : i32
    return %c0_i32, %c0_i32_0 : i32, i32
  }
  func.func @transform_9(%arg0: i32) -> (i32, i32) {
    %c0_i32 = arith.constant 0 : i32
    %c0_i32_0 = arith.constant 0 : i32
    %c0_i32_1 = arith.constant 0 : i32
    return %c0_i32, %c0_i32_0 : i32, i32
  }
  func.func @transform_10(%arg0: i32) -> (i32, i32) {
    %c0_i32 = arith.constant 0 : i32
    %c0_i32_0 = arith.constant 0 : i32
    %c0_i32_1 = arith.constant 0 : i32
    return %c0_i32, %c0_i32_0 : i32, i32
  }
  func.func @transform_11(%arg0: i32) -> (i32, i32) {
    %c0_i32 = arith.constant 0 : i32
    %c0_i32_0 = arith.constant 0 : i32
    %c0_i32_1 = arith.constant 0 : i32
    return %c0_i32, %c0_i32_0 : i32, i32
  }
  func.func @transform_12(%arg0: i32) -> (i32, i32) {
    %c0_i32 = arith.constant 0 : i32
    %c0_i32_0 = arith.constant 0 : i32
    %c0_i32_1 = arith.constant 0 : i32
    return %c0_i32, %c0_i32_0 : i32, i32
  }
  func.func @transform_13(%arg0: i32) -> (i32, i32) {
    %c0_i32 = arith.constant 0 : i32
    %c0_i32_0 = arith.constant 0 : i32
    %c0_i32_1 = arith.constant 0 : i32
    return %c0_i32, %c0_i32_0 : i32, i32
  }
  func.func @transform_14(%arg0: i32) -> (i32, i32) {
    %c0_i32 = arith.constant 0 : i32
    %c0_i32_0 = arith.constant 0 : i32
    %c0_i32_1 = arith.constant 0 : i32
    return %c0_i32, %c0_i32_0 : i32, i32
  }
  func.func @transform_15(%arg0: i32) -> (i32, i32) {
    %c0_i32 = arith.constant 0 : i32
    %c0_i32_0 = arith.constant 0 : i32
    %c0_i32_1 = arith.constant 0 : i32
    return %c0_i32, %c0_i32_0 : i32, i32
  }
  func.func @transform_16(%arg0: i32) -> (i32, i32) {
    %c0_i32 = arith.constant 0 : i32
    %c0_i32_0 = arith.constant 0 : i32
    %c0_i32_1 = arith.constant 0 : i32
    return %c0_i32, %c0_i32_0 : i32, i32
  }
  func.func @transform_17(%arg0: i32) -> (i32, i32) {
    %c0_i32 = arith.constant 0 : i32
    %c0_i32_0 = arith.constant 0 : i32
    %c0_i32_1 = arith.constant 0 : i32
    return %c0_i32, %c0_i32_0 : i32, i32
  }
}

</mosaic_0001>

<bundles_post_ra>
// kernel: fused_selector_call.1
= control target key start
LH: loop header
LB: loop body
LE: loop exit
PB: predicated region body
PF: predicated region fallthrough
CT: control target
= control target key end

     0   :  { %s1356_s0 = inlined_call_operand.vmem [shape: f32[8,32], index: 0, kind: input, shape index: {}]   ;;  %s1357_s1 = inlined_call_operand.vmem [shape: f32[8,32], index: 1, kind: input, shape index: {}]   ;;  %s1358_s2 = inlined_call_operand.vmem [shape: f32[8,64], index: 2, kind: input, shape index: {}]   ;;  %s1359_s3 = inlined_call_operand.vmem [shape: f32[16,96], index: 3, kind: input, shape index: {}]   ;;  %s1360_s4 = inlined_call_operand.vmem [shape: f32[32,32], index: 4, kind: input, shape index: {}]   ;;  %s1361_s5 = inlined_call_operand.vmem [shape: f32[1,32], index: 5, kind: input, shape index: {}]   ;;  %s1362_s6 = inlined_call_operand.vmem [shape: f32[32,32], index: 6, kind: input, shape index: {}]   ;;  %s1363_s7 = inlined_call_operand.vmem [shape: f32[1,32], index: 7, kind: input, shape index: {}]   ;;  %s1364_s8 = inlined_call_operand.vmem [shape: f32[64,32], index: 8, kind: input, shape index: {}]   ;;  %s1365_s9 = inlined_call_operand.vmem [shape: f32[1,32], index: 9, kind: input, shape index: {}]   ;;  %s1366_s10 = inlined_call_operand.vmem [shape: f32[96,32], index: 10, kind: input, shape index: {}]   ;;  %s1367_s11 = inlined_call_operand.vmem [shape: f32[1,32], index: 11, kind: input, shape index: {}]   ;;  %s1368_s12 = inlined_call_operand.vmem [shape: f32[1,32], index: 12, kind: input, shape index: {}]   ;;  %s1369_s13 = inlined_call_operand.<no memory space> [shape: f32[1,1], index: 13, kind: input, shape index: {}]   ;;  %s1370_s14 = inlined_call_operand.vmem [shape: f32[1,32], index: 14, kind: input, shape index: {}]   ;;  %s1371_s16 = inlined_call_operand.hbm [shape: f32[8,128], index: 16, kind: output, shape index: {0}]   ;;  %s1372_s17 = inlined_call_operand.hbm [shape: f32[16,128], index: 17, kind: output, shape index: {1}]   ;;  %s1373_s15 = inlined_call_operand.<no memory space> [shape: f32[1,1], index: 15, kind: input, shape index: {}]  }
   0x1   :  { %1374 = sst [smem:[#allocation10_spill]] %s1356_s0  ;;  %v23_v0 = vstv %s1369_s13  ;;  %v25_v1 = vstv %s1373_s15 }
   0x2   :  { %1375 = sst [smem:[#allocation11_spill]] %s1357_s1  ;;  %24 = vst [vmem:[#allocation2] sm:$0x1] %v23_v0  ;;  %26 = vst [vmem:[#allocation3] sm:$0x1] %v25_v1 }
   0x3   :  { %27 = vsyncpa [#allocation5], 0  ;;  %v62_v2 = vld [vmem:[%s1360_s4] sm:$0xff]  ;;  %v63_v3 = vld [vmem:[%s1360_s4 + $0x8] sm:$0xff]  ;;  %v1049_v5 = vmov 0.0|0.0   ;;  %vm1050_vm0 = vmmov 0  }
   0x4   :  { %v64_v4 = vld [vmem:[%s1360_s4 + $0x10] sm:$0xff]  ;;  %901 = vmatprep.subr.bf16.mxu0 %v1049_v5  ;;  %v902_v6 = vpack.c.bf16 %v63_v3, %v62_v2  ;;  %v65_v7 = vld [vmem:[%s1360_s4 + $0x18] sm:$0xff]  ;;  %v1051_v8 = vmov 0.0   ;;  %907 = vmatprep.subr.bf16.mxu1 %v1049_v5  ;;  %v247_v10 = vld [vmem:[%s1364_s8] sm:$0xff] }
   0x5   :  { %827 = vmatprep.mubr.msk.f32.mxu0 %vm1050_vm0, %v1051_v8  ;;  %838 = vmatprep.mubr.msk.f32.mxu1 %vm1050_vm0, %v1051_v8  ;;  %v905_v9 = vpack.c.bf16 %v65_v7, %v64_v4  ;;  %v248_v11 = vld [vmem:[%s1364_s8 + $0x8] sm:$0xff] }
   0x6   :  { %903 = vmatpush3.bf16.msra.mxu0 %v902_v6 }
   0x7   :  { %904 = vmatprep.subr.bf16.mxu0 %v1049_v5 }
   0x8   :  { %28 = vsyncpa [#allocation7], 0  ;;  %s1376_s24 = sld [smem:[#allocation10_spill]]  ;;  %vm73_vm1 = vcmask 261120   ;;  %v914_v13 = vpack.c.bf16 %v248_v11, %v247_v10  ;;  %v249_v14 = vld [vmem:[%s1364_s8 + $0x10] sm:$0xff]  ;;  %v250_v15 = vld [vmem:[%s1364_s8 + $0x18] sm:$0xff] }
   0x9   :  { %v917_v16 = vpack.c.bf16 %v250_v15, %v249_v14  ;;  %v251_v17 = vld [vmem:[%s1364_s8 + $0x20] sm:$0xff]  ;;  %v252_v18 = vld [vmem:[%s1364_s8 + $0x28] sm:$0xff]  ;;  %v253_v20 = vld [vmem:[%s1364_s8 + $0x30] sm:$0xff]  ;;  %vm264_vm2 = vcmask 523264   ;;  %s1377_s29 = sld [smem:[#allocation11_spill]]  ;;  %vm348_vm3 = vcmask 1040384  }
   0xa   :  { %906 = vmatpush3.bf16.msra.mxu0 %v905_v9  ;;  %v920_v19 = vpack.c.bf16 %v252_v18, %v251_v17  ;;  %v254_v21 = vld [vmem:[%s1364_s8 + $0x38] sm:$0xff]  ;;  %v246_v23 = vld [vmem:[%s1358_s2] sm:$0xff]  ;;  %v156_v25 = vld [vmem:[%s1362_s6 + $0x8] sm:$0xff]  ;;  %vm486_vm5 = vcmask 785408   ;;  %vm441_vm6 = vcmask 72712   ;;  %vm452_vm7 = vcmask 64512  }
   0xb   :  { %913 = vmatprep.subr.bf16.mxu0 %v1049_v5  ;;  %v923_v22 = vpack.c.bf16 %v254_v21, %v253_v20  ;;  %v155_v24 = vld [vmem:[%s1362_s6] sm:$0xff]  ;;  %v157_v27 = vld [vmem:[%s1362_s6 + $0x10] sm:$0xff]  ;;  %v158_v28 = vld [vmem:[%s1362_s6 + $0x18] sm:$0xff]  ;;  %vm458_vm8 = vcmask 7168   ;;  %vm460_vm9 = vcmask 72704  }
   0xc   :  { %v908_v26 = vpack.c.bf16 %v156_v25, %v155_v24  ;;  %v911_v29 = vpack.c.bf16 %v158_v28, %v157_v27  ;;  %v758_v31 = vld [vmem:[%s1361_s5] ss:$0 sm:$0xff]  ;;  %v466_v55 = vld [vmem:[%s1366_s10 + $0x8] sm:$0xff]  ;;  %vm1240_vm4 = vmpackc.low %vm73_vm1, %vm73_vm1 }
   0xd   :  { %v762_v37 = vld [vmem:[%s1365_s9] ss:$0 sm:$0xff]  ;;  %v467_v63 = vld [vmem:[%s1366_s10 + $0x10] sm:$0xff]  ;;  %v468_v0 = vld [vmem:[%s1366_s10 + $0x18] sm:$0xff] }
   0xe   :  { %v61_v12 = vld [vmem:[%s1376_s24] sm:$0xff]  ;;  %909 = vmatpush3.bf16.msra.mxu1 %v908_v26  ;;  %v933_v3 = vpack.c.bf16 %v468_v0, %v467_v63  ;;  %v470_v6 = vld [vmem:[%s1366_s10 + $0x28] sm:$0xff]  ;;  %v472_v9 = vld [vmem:[%s1366_s10 + $0x38] sm:$0xff] }
   0xf   :  { %828 = vmatmul.mubr.msk.f32.vlgmr.msra.gmra.mrb[0].mxu0 %vm73_vm1, %v61_v12  ;;  %910 = vmatprep.subr.bf16.mxu1 %v1049_v5  ;;  %v154_v30 = vld [vmem:[%s1377_s29] sm:$0xff]  ;;  %v474_v12 = vld [vmem:[%s1366_s10 + $0x48] sm:$0xff]  ;;  %v475_v14 = vld [vmem:[%s1366_s10 + $0x50] sm:$0xff] }
  0x10   :  { %915 = vmatpush3.bf16.msra.mxu0 %v914_v13  ;;  %857 = vmatprep.mubr.msk.f32.mxu0 %vm1050_vm0, %v1051_v8  ;;  %v760_v43 = vld [vmem:[%s1363_s7] ss:$0 sm:$0xff]  ;;  %v476_v15 = vld [vmem:[%s1366_s10 + $0x58] sm:$0xff]  ;;  %v464_v17 = vld [vmem:[%s1359_s3 + $0x8] sm:$0xff] }
  0x11   :  { %916 = vmatprep.subr.bf16.mxu0 %v1049_v5  ;;  %v256_v53 = vld [vmem:[%s1368_s12] sm:$0x1] }
  0x12   :  { %912 = vmatpush3.bf16.msra.mxu1 %v911_v29  ;;  %v465_v54 = vld [vmem:[%s1366_s10] sm:$0xff] }
  0x13   :  { %925 = vmatprep.subr.bf16.mxu1 %v1049_v5  ;;  %v929_v61 = vpack.c.bf16 %v466_v55, %v465_v54  ;;  %v463_v4 = vld [vmem:[%s1359_s3] sm:$0xff] }
  0x14   :  { %918 = vmatpush3.bf16.msra.mxu0 %v917_v16  ;;  %v473_v11 = vld [vmem:[%s1366_s10 + $0x40] sm:$0xff]  ;;  %v949_v16 = vpack.c.bf16 %v476_v15, %v475_v14 }
  0x15   :  { %919 = vmatprep.subr.bf16.mxu0 %v1049_v5  ;;  %839 = vmatmul.mubr.msk.f32.vlgmr.msra.gmra.mrb[0].mxu1 %vm73_vm1, %v154_v30  ;;  %v945_v13 = vpack.c.bf16 %v474_v12, %v473_v11  ;;  %v769_v28 = vld [vmem:[%s1367_s11] ss:$0 sm:$0xff]  ;;  %s1052_s11 = smov 127  }
  0x16   :  { %864 = vmatprep.mubr.msk.f32.mxu1 %vm1050_vm0, %v1051_v8  ;;  %v471_v8 = vld [vmem:[%s1366_s10 + $0x30] sm:$0xff] }
  0x17   :  { %v941_v10 = vpack.c.bf16 %v472_v9, %v471_v8 }
  0x18   :  { %921 = vmatpush3.bf16.msra.mxu0 %v920_v19 }
  0x19   :  { %922 = vmatprep.subr.bf16.mxu0 %v1049_v5  ;;  %v469_v5 = vld [vmem:[%s1366_s10 + $0x20] sm:$0xff] }
  0x1a   :  { %v937_v7 = vpack.c.bf16 %v470_v6, %v469_v5 }
  0x1c   :  { %924 = vmatpush3.bf16.msra.mxu0 %v923_v22 }
  0x1f   :  { %858 = vmatmul.mubr.msk.f32.vlgmr.msra.gmra.mrb[2].mxu0 %vm264_vm2, %v246_v23  ;;  %v478_v23 = vld [vmem:[%s1370_s14] sm:$0x1]  ;;  %s1053_s14 = smov [#allocation4]  }
  0x20   :  { %s734_s21 = sshll.u32 %s1053_s14, 4  ;;  %s735_s21 = int_to_ptr.vmem [resolvable:$true] %s734_s21 }
  0x21   :  { %s1001_s22 = scalar_lea.vmem %s735_s21, 128  ;;  %p1006_p1 = scmp.lt.s32.totalorder %s735_s21, %s735_s21 }
  0x22   :  { %p1002_p0 = scmp.ne.s32.totalorder %s735_s21, %s1001_s22  ;;  %p1007_p2 = scmp.lt.s32.totalorder %s1001_s22, %s1001_s22 }
  0x24   :  { %p1008_p3 = por %p1007_p2, %p1006_p1 }
  0x26   :  { %p1009_p4 = pnand %p1008_p3, %p1002_p0 }
  0xe2   :  { %v143_v32 = vpop.f32.mrb[0].mxu0 }
  0xe3   :  { %v144_v33 = vadd.f32 %v758_v31, %v143_v32  ;;  %v829_v34 = vpop.f32.mrb[1].mxu0 }
  0xe5   :  { %v147_v35 = vmul.f32 %v144_v33, %v144_v33 }
  0xe7   :  { %v148_v36 = vsel %vm73_vm1, %v147_v35, 0.0 }
  0xe8   :  { %149 = vadd.xlane.f32.xlu0 %v148_v36  ;;  %v235_v44 = vpop.f32.mrb[0].mxu1 }
  0xe9   :  { %v236_v45 = vadd.f32 %v760_v43, %v235_v44  ;;  %v840_v46 = vpop.f32.mrb[1].mxu1 }
  0xeb   :  { %v239_v47 = vmul.f32 %v236_v45, %v236_v45 }
  0xed   :  { %v240_v48 = vsel %vm73_vm1, %v239_v47, 0.0 }
  0xee   :  { %241 = vadd.xlane.f32.xlu1 %v240_v48 }
  0xf2   :  { %v334_v38 = vpop.f32.mrb[2].mxu0 }
  0xf3   :  { %v335_v39 = vadd.f32 %v762_v37, %v334_v38  ;;  %v859_v40 = vpop.f32.mrb[3].mxu0 }
  0xf5   :  { %v338_v41 = vmul.f32 %v335_v39, %v335_v39 }
  0xf7   :  { %v339_v42 = vsel %vm73_vm1, %v338_v41, 0.0 }
  0xf8   :  { %340 = vadd.xlane.f32.xlu0 %v339_v42 }
 0x175   :  { %v150_v49 = vpop.xlane.xlu0 %149 }
 0x176   :  { %v151_v50 = vmax.f32 %v150_v49, 1e-24 }
 0x178   :  { %967 = vrsqrt.f32 %v151_v50 }
 0x17b   :  { %v242_v18 = vpop.xlane.xlu1 %241 }
 0x17c   :  { %v243_v19 = vmax.f32 %v242_v18, 1e-24 }
 0x182   :  { %v968_v51 = vpop.eup %967 }
 0x183   :  { %v153_v52 = vmul.f32 %v968_v51, %v144_v33 }
 0x185   :  { %v346_v56 = vrot.slane %v153_v52, 7  ;;  %v341_v57 = vpop.xlane.xlu0 %340 }
 0x186   :  { %v342_v58 = vmax.f32 %v341_v57, 1e-24 }
 0x187   :  { %v349_v59 = vsel %vm348_vm3, %v256_v53, %v346_v56 }
 0x188   :  { %969 = vrsqrt.f32 %v342_v58  ;;  %v926_v62 = vpack.c.bf16 %v346_v56, %v349_v59 }
 0x189   :  { %971 = vrsqrt.f32 %v243_v19 }
 0x18a   :  { %928 = vmatpush3.bf16.xpose.msk.msra.mxu1 %vm1240_vm4, %v926_v62 }
 0x18b   :  { %930 = vmatprep.subr.bf16.mxu1 %v929_v61 }
 0x192   :  { %v970_v1 = vpop.eup %969 }
 0x193   :  { %v344_v2 = vmul.f32 %v970_v1, %v335_v39  ;;  %v972_v20 = vpop.eup %971 }
 0x194   :  { %v245_v21 = vmul.f32 %v972_v20, %v236_v45 }
 0x195   :  { %865 = vmatmul.mubr.msk.f32.vlgmr.msra.gmra.mrb[2].mxu1 %vm73_vm1, %v344_v2 }
 0x196   :  { %932 = vmatpush3.bf16.msra.mxu1 %v929_v61  ;;  %891 = vmatprep.mubr.msk.f32.mxu1 %vm486_vm5, %v463_v4  ;;  %v583_v22 = vrot.slane %v245_v21, 7  ;;  %v767_v4 = vld [vmem:[#allocation2] ss:$0 sm:$0xff] }
 0x197   :  { %934 = vmatprep.subr.bf16.mxu1 %v933_v3 }
 0x198   :  { %v585_v24 = vsel %vm348_vm3, %v478_v23, %v583_v22 }
 0x199   :  { %v953_v25 = vpack.c.bf16 %v583_v22, %v585_v24 }
 0x19a   :  { %936 = vmatpush3.bf16.msra.mxu1 %v933_v3 }
 0x19b   :  { %938 = vmatprep.subr.bf16.mxu1 %v937_v7  ;;  %955 = vmatprep.subr.msk.bf16.mxu0 %vm1240_vm4, %v953_v25 }
 0x19c   :  { %958 = vmatpush3.bf16.xpose.msk.msra.mxu0 %vm1240_vm4, %v953_v25 }
 0x19e   :  { %940 = vmatpush3.bf16.msra.mxu1 %v937_v7 }
 0x19f   :  { %942 = vmatprep.subr.bf16.mxu1 %v941_v10 }
 0x1a2   :  { %944 = vmatpush3.bf16.msra.mxu1 %v941_v10 }
 0x1a3   :  { %946 = vmatprep.subr.bf16.mxu1 %v945_v13 }
 0x1a6   :  { %948 = vmatpush3.bf16.msra.mxu1 %v945_v13 }
 0x1a7   :  { %950 = vmatprep.subr.bf16.mxu1 %v949_v16 }
 0x1aa   :  { %952 = vmatpush3.bf16.msra.mxu1 %v949_v16 }
 0x1ad   :  { %892 = vmatmul.mubr.msk.f32.vlgmr.msra.gmra.mrb[4].mxu1 %vm486_vm5, %v464_v17 }
 0x268   :  { %v1293_v26 = vpop.f32.mrb[2].mxu1 }
 0x269   :  { %v866_v27 = vpop.f32.mrb[3].mxu1  ;;  %v442_v37 = vsel %vm441_vm6, %v1293_v26, -inf  ;;  %v434_v5 = vadd.f32 %v767_v4, %v1293_v26 }
 0x26b   :  { %v768_v6 = vmul.f32 -1.442695, %v434_v5 }
 0x280   :  { %v893_v29 = vpop.f32.mrb[4].mxu1 }
 0x281   :  { %v565_v30 = vadd.f32 %v893_v29, %v769_v28  ;;  %v559_v31 = vpop.f32.mrb[5].mxu1 }
 0x282   :  { %v560_v32 = vadd.f32 %v769_v28, %v559_v31 }
 0x283   :  { %v569_v33 = vmul.f32 %v565_v30, %v565_v30 }
 0x284   :  { %v568_v34 = vmul.f32 %v560_v32, %v560_v32 }
 0x285   :  { %v573_v35 = vsel %vm73_vm1, %v569_v33, 0.0 }
 0x286   :  { %574 = vadd.xlane.f32.xlu0 %v573_v35  ;;  %v570_v36 = vsel %vm73_vm1, %v568_v34, 0.0 }
 0x287   :  { %571 = vadd.xlane.f32.xlu1 %v570_v36 }
 0x28b   :  { %443 = vmax.xlane.f32.xlu1 %v442_v37 }
 0x313   :  { %v575_v38 = vpop.xlane.xlu0 %574 }
 0x314   :  { %v577_v39 = vmax.f32 %v575_v38, 1e-24  ;;  %v572_v40 = vpop.xlane.xlu1 %571 }
 0x315   :  { %v576_v41 = vmax.f32 %v572_v40, 1e-24 }
 0x316   :  { %973 = vrsqrt.f32 %v577_v39 }
 0x317   :  { %975 = vrsqrt.f32 %v576_v41 }
 0x318   :  { %v444_v50 = vpop.xlane.xlu1 %443 }
 0x319   :  { %v445_v51 = vsub.f32 %v1293_v26, %v444_v50 }
 0x31b   :  { %v446_v52 = vmul.f32 1.442695, %v445_v51 }
 0x31d   :  { %977 = vpow2.f32 %v446_v52 }
 0x320   :  { %v974_v42 = vpop.eup %973 }
 0x321   :  { %v976_v43 = vpop.eup %975  ;;  %v581_v45 = vmul.f32 %v974_v42, %v565_v30 }
 0x322   :  { %v580_v44 = vmul.f32 %v976_v43, %v560_v32 }
 0x324   :  { %898 = vmatprep.mubr.msk.f32.mxu0 %vm73_vm1, %v580_v44 }
 0x325   :  { %899 = vmatmul.mubr.msk.f32.vlgmr.msra.gmra.mrb[4].mxu0 %vm73_vm1, %v581_v45 }
 0x327   :  { %v978_v53 = vpop.eup %977 }
 0x3f8   :  { %v1304_v46 = vpop.f32.mrb[4].mxu0 }
 0x3f9   :  { %v1306_v47 = vpop.f32.mrb[5].mxu0  ;;  %v695_v48 = vsel %vm441_vm6, %v1304_v46, -inf }
 0x3fa   :  { %696 = vmax.xlane.f32.xlu1 %v695_v48  ;;  %v692_v49 = vsel %vm441_vm6, %v1306_v47, -inf }
 0x3fb   :  { %693 = vmax.xlane.f32.xlu0 %v692_v49 }
 0x411   :  { %449 = vrot.lane.b32.xlu0 %v978_v53, %s1052_s11 }
 0x487   :  { %v697_v54 = vpop.xlane.xlu1 %696 }
 0x488   :  { %v694_v55 = vpop.xlane.xlu0 %693  ;;  %v699_v56 = vsub.f32 %v1304_v46, %v697_v54 }
 0x489   :  { %v698_v57 = vsub.f32 %v1306_v47, %v694_v55 }
 0x48a   :  { %v702_v59 = vmul.f32 1.442695, %v699_v56 }
 0x48b   :  { %v700_v58 = vmul.f32 1.442695, %v698_v57 }
 0x48c   :  { %v450_v62 = vpop.permute.xlu0 %449 }
 0x48d   :  { %979 = vpow2.f32 %v700_v58  ;;  %v453_v63 = vsel %vm452_vm7, %v450_v62, 0.0 }
 0x48e   :  { %981 = vpow2.f32 %v702_v59 }
 0x48f   :  { %983 = vpow2.f32 %v768_v6 }
 0x497   :  { %v1315_v60 = vpop.eup %979 }
 0x498   :  { %706 = vrot.lane.b32.xlu1 %v1315_v60, %s1052_s11  ;;  %v1318_v61 = vpop.eup %981 }
 0x499   :  { %v984_v7 = vpop.eup %983 }
 0x49a   :  { %v438_v8 = vadd.f32 1.0, %v984_v7 }
 0x49c   :  { %708 = vrot.lane.b32.xlu1 %v1318_v61, %s1052_s11 }
 0x4c0   :  { %454 = vadd.xlane.f32.xlu1 %v453_v63 }
 0x50a   :  { %v707_v0 = vpop.permute.xlu1 %706 }
 0x50b   :  { %v712_v1 = vsel %vm452_vm7, %v707_v0, 0.0 }
 0x50c   :  { %713 = vadd.xlane.f32.xlu0 %v712_v1 }
 0x50e   :  { %v709_v2 = vpop.permute.xlu1 %708 }
 0x50f   :  { %v715_v3 = vsel %vm452_vm7, %v709_v2, 0.0 }
 0x510   :  { %716 = vadd.xlane.f32.xlu0 %v715_v3 }
 0x54d   :  { %v455_v9 = vpop.xlane.xlu1 %454 }
 0x54e   :  { %985 = vrcp.f32 %v455_v9 }
 0x54f   :  { %987 = vrcp.f32 %v438_v8 }
 0x558   :  { %v986_v10 = vpop.eup %985 }
 0x559   :  { %v457_v11 = vmul.f32 %v986_v10, %v978_v53  ;;  %v988_v12 = vpop.eup %987 }
 0x55b   :  { %v459_v13 = vsel %vm458_vm8, %v988_v12, %v457_v11 }
 0x55c   :  { %v461_v14 = vsel %vm460_vm9, %v459_v13, 0.0 }
 0x55d   :  { %462 = vst [vmem:[#allocation4] sm:$0xff] %v461_v14 }
 0x55e   :  { %1012 = shalt.err (!%p1009_p4)
}
 0x55f   :  { %s1013_s24 = scalar_lea.hbm %s1371_s16, 128 }
 0x560   :  { %p1014_p5 = scmp.ne.s32.totalorder %s1371_s16, %s1013_s24  ;;  %p1017_p6 = scmp.lt.u32.totalorder %s1013_s24, %s1371_s16 }
 0x562   :  { %p1019_p7 = pnand %p1017_p6, %p1014_p5 }
 0x564   :  { %1022 = shalt.err (!%p1019_p7)
}
 0x565   :  { %737 = dma.vmem_to_hbm [thread:$0]  %s735_s21, 128, %s1371_s16, [#allocation5]   ;;  %v776_v15 = vld [vmem:[#allocation3] ss:$0 sm:$0xff] }
 0x566   :  { %v678_v16 = vadd.f32 %v776_v15, %v1306_v47  ;;  %v679_v17 = vadd.f32 %v1304_v46, %v776_v15  ;;  %s1054_s16 = smov [#allocation6]  }
 0x567   :  { %s743_s29 = sshll.u32 %s1054_s16, 4  ;;  %s744_s29 = int_to_ptr.vmem [resolvable:$true] %s743_s29 }
 0x568   :  { %v777_v18 = vmul.f32 -1.442695, %v678_v16  ;;  %v778_v19 = vmul.f32 -1.442695, %v679_v17  ;;  %s1023_s0 = scalar_lea.vmem %s744_s29, 256  ;;  %p1028_p9 = scmp.lt.s32.totalorder %s744_s29, %s744_s29 }
 0x569   :  { %p1024_p8 = scmp.ne.s32.totalorder %s744_s29, %s1023_s0  ;;  %p1029_p10 = scmp.lt.s32.totalorder %s1023_s0, %s1023_s0 }
 0x56a   :  { %989 = vpow2.f32 %v777_v18 }
 0x56b   :  { %991 = vpow2.f32 %v778_v19  ;;  %p1030_p11 = por %p1029_p10, %p1028_p9 }
 0x56d   :  { %p1031_p12 = pnand %p1030_p11, %p1024_p8 }
 0x574   :  { %v990_v20 = vpop.eup %989 }
 0x575   :  { %v686_v21 = vadd.f32 1.0, %v990_v20  ;;  %v992_v22 = vpop.eup %991 }
 0x576   :  { %v687_v24 = vadd.f32 1.0, %v992_v22 }
 0x599   :  { %v714_v23 = vpop.xlane.xlu0 %713 }
 0x59a   :  { %993 = vrcp.f32 %v714_v23 }
 0x59b   :  { %995 = vrcp.f32 %v686_v21 }
 0x59d   :  { %v717_v25 = vpop.xlane.xlu0 %716 }
 0x59e   :  { %997 = vrcp.f32 %v717_v25 }
 0x59f   :  { %999 = vrcp.f32 %v687_v24 }
 0x5a4   :  { %v994_v26 = vpop.eup %993 }
 0x5a5   :  { %v720_v27 = vmul.f32 %v994_v26, %v1315_v60  ;;  %v996_v28 = vpop.eup %995 }
 0x5a7   :  { %v722_v29 = vsel %vm458_vm8, %v996_v28, %v720_v27 }
 0x5a8   :  { %v998_v30 = vpop.eup %997  ;;  %v724_v31 = vsel %vm460_vm9, %v722_v29, 0.0 }
 0x5a9   :  { %v721_v32 = vmul.f32 %v998_v30, %v1318_v61  ;;  %726 = vst [vmem:[#allocation6] sm:$0xff] %v724_v31  ;;  %v1000_v33 = vpop.eup %999 }
 0x5ab   :  { %v723_v34 = vsel %vm458_vm8, %v1000_v33, %v721_v32 }
 0x5ac   :  { %v725_v35 = vsel %vm460_vm9, %v723_v34, 0.0 }
 0x5ad   :  { %727 = vst [vmem:[#allocation6 + $0x8] sm:$0xff] %v725_v35 }
 0x5ae   :  { %1034 = shalt.err (!%p1031_p12)
}
 0x5af   :  { %s1035_s18 = scalar_lea.hbm %s1372_s17, 256 }
 0x5b0   :  { %p1036_p13 = scmp.ne.s32.totalorder %s1372_s17, %s1035_s18  ;;  %p1039_p0 = scmp.lt.u32.totalorder %s1035_s18, %s1372_s17 }
 0x5b2   :  { %p1041_p1 = pnand %p1039_p0, %p1036_p13 }
 0x5b4   :  { %1044 = shalt.err (!%p1041_p1)
}
 0x5b5   :  { %s1055_s15 = smov 128   ;;  %s1056_s1 = smov 8  }
 0x5b6   :  { %749 = dma.vmem_to_hbm [thread:$0]  %s744_s29, 256, %s1372_s17, [#allocation7], %s1055_s15, %s1055_s15, %s1056_s1  }
 0x5b7   :  { %1045 = dma.done.wait [#allocation5], 128  }
 0x5b8   :  { %1046 = vsyncadd [#allocation5], 4294967168 }
 0x5b9   :  { %1047 = dma.done.wait [#allocation7], 256  }
 0x5ba   :  { %1048 = vsyncadd [#allocation7], 4294967040 }
 0x5bb   :  { %756 = vsyncpa [#allocation5], 1 }
 0x5bc   :  { %757 = vsyncpa [#allocation7], 1 }

</bundles_post_ra>
